<compile_context>
chip_gen: v5e
topology: v5e:2x2
jax: 0.10.0
libtpu: 0.0.40
codegen_flags: <defaults>
</compile_context>

<pallas_src>
import jax
import jax.numpy as jnp
from jax.experimental import pallas as pl
from jax.experimental.pallas import tpu as pltpu

ALPHA = 0.25
GAMMA = 2                  # kernel hard-codes (1 - pt)**2 below
assert GAMMA == 2, "kernel implements gamma == 2 as an explicit square"

LANE = 128
ROW_CHUNK = 512            # rows per in-kernel compute chunk (multiple of 32)
DEFAULT_ROW_TILE = 4096    # rows per grid block: 4096*128*4 B = 2 MiB f32 block.
                           # 2 inputs x 2 pipeline buffers = 8 MiB -> fits the
                           # 16 MiB v5e scoped-VMEM default. Sweep to 8192 on
                           # v7x (raise vmem_limit_bytes) for ~5-10% less
                           # per-step overhead at its faster HBM.


def _tile_loss_partial(x, t):
    """Focal-loss partial sum of an (r, 128) f32 tile, folded to (8, 128).

    r is a multiple of 8; folding the leading axis lowers to plain VPU vector
    adds (no cross-lane XLU reduce). The single cross-lane reduction happens
    once, in the wrapper.
    """
    # binary_cross_entropy_with_logits, reduction='none' (stable form):
    #   ce = max(x, 0) - x*t + log(1 + exp(-|x|))
    ce = jnp.maximum(x, 0.0) - x * t + jnp.log1p(jnp.exp(-jnp.abs(x)))
    # alpha weighting: t*0.25 + (1-t)*0.75 == 0.75 - 0.5*t  (2 VALU ops, not 4)
    alpha_w = 0.75 - 0.5 * t
    # NOTE: matches the PyTorch module exactly — pt uses the RAW logits `pred`,
    # not sigmoid(pred).  d = 1 - pt computed directly with one select.
    d = jnp.where(t == 1.0, 1.0 - x, x)
    loss = alpha_w * (d * d) * ce            # gamma == 2 -> explicit square
    r = loss.shape[0]
    return loss.reshape(r // 8, 8, LANE).sum(axis=0)


def _focal_loss_kernel(pred_ref, tgt_ref, out_ref):
    rt = pred_ref.shape[0]                   # rows in this grid block (static)
    chunk = min(rt, ROW_CHUNK)
    n_full = rt // chunk
    rem = rt - n_full * chunk                # static; multiple of sublane tile

    def load(start, size):
        x = pred_ref[pl.ds(start, size), :].astype(jnp.float32)
        t = tgt_ref[pl.ds(start, size), :].astype(jnp.float32)
        return x, t

    def body(c, acc):
        start = pl.multiple_of(c * chunk, chunk)
        x, t = load(start, chunk)
        return acc + _tile_loss_partial(x, t)

    acc = jax.lax.fori_loop(0, n_full, body,
                            jnp.zeros((8, LANE), jnp.float32), unroll=True)
    if rem > 0:                              # static tail chunk of this block
        x, t = load(n_full * chunk, rem)
        acc = acc + _tile_loss_partial(x, t)
    out_ref[...] = acc


def _sublane(dtype):
    # sublane tile of the second-minor dim: 8 (4B), 16 (2B), 32 (1B) dtypes
    return max(8, 32 // dtype.itemsize)


def _choose_tiling(rows, row_tile, sub):
    """Pick (rows_per_block, num_blocks); rows_per_block is a multiple of sub."""
    rows_a = (rows // sub) * sub             # rows the kernel can cover
    if rows_a < sub:
        return 0, 0                          # tiny input: wrapper XLA handles it
    # Large blocks divide evenly into in-kernel ROW_CHUNK chunks.
    row_tile = max(ROW_CHUNK, (row_tile // ROW_CHUNK) * ROW_CHUNK)
    if rows_a >= 2 * row_tile:
        return row_tile, rows_a // row_tile
    # Small input: split into 2 blocks so the 'parallel' grid axis can use both
    # v7x TensorCores (no-op on single-TC v5e/v6e).
    if rows_a >= 2 * sub:
        return (rows_a // (2 * sub)) * sub, 2
    return rows_a, 1


def _focal_loss_sum_xla(pred_flat, tgt_flat):
    """Plain-XLA focal-loss SUM for the small remainder the grid skips."""
    x = pred_flat.astype(jnp.float32)
    t = tgt_flat.astype(jnp.float32)
    ce = jnp.maximum(x, 0.0) - x * t + jnp.log1p(jnp.exp(-jnp.abs(x)))
    alpha_w = 0.75 - 0.5 * t
    d = jnp.where(t == 1.0, 1.0 - x, x)
    return jnp.sum(alpha_w * (d * d) * ce)


def focal_loss(pred, target, *, row_tile=DEFAULT_ROW_TILE):
    """pred, target: matching shapes (any rank). Returns scalar f32 mean focal loss."""
    assert pred.shape == target.shape
    total = pred.size
    assert total > 0

    flat_p = pred.reshape(-1)                # contiguous reshape: no copy
    flat_t = target.reshape(-1)

    sub = max(_sublane(pred.dtype), _sublane(target.dtype))
    rows = total // LANE                     # full 128-lane rows
    rt, num_blocks = _choose_tiling(rows, row_tile, sub)
    covered = num_blocks * rt * LANE         # elements handled by the kernel

    loss_sum = jnp.float32(0.0)

    if covered > 0:
        main = rows * LANE
        if main == total:
            # Common case (total % 128 == 0): zero-copy lane-dense reshape.
            p2d = flat_p.reshape(rows, LANE)
            t2d = flat_t.reshape(rows, LANE)
        else:
            # Ragged total: 128-aligned prefix for the kernel.
            # TODO(synk): this prefix slice may materialize a copy; only the
            # total % 128 != 0 case pays it (the tail is summed by XLA below).
            p2d = flat_p[:main].reshape(rows, LANE)
            t2d = flat_t[:main].reshape(rows, LANE)

        partials = pl.pallas_call(
            _focal_loss_kernel,
            out_shape=jax.ShapeDtypeStruct((num_blocks * 8, LANE), jnp.float32),
            grid_spec=pltpu.PrefetchScalarGridSpec(
                num_scalar_prefetch=0,
                grid=(num_blocks,),
                in_specs=[
                    pl.BlockSpec((rt, LANE), lambda i: (i, 0)),
                    pl.BlockSpec((rt, LANE), lambda i: (i, 0)),
                ],
                out_specs=pl.BlockSpec((8, LANE), lambda i: (i, 0)),
            ),
            compiler_params=pltpu.CompilerParams(
                # Blocks are independent (no carried accumulator): 'parallel'
                # lets v7x shard the grid across both TensorCores.
                dimension_semantics=("parallel",),
            ),
        )(p2d, t2d)
        loss_sum = loss_sum + jnp.sum(partials)

    if covered < total:
        # Rows/elements not covered by the grid (< rt*128 + 128 elements):
        # cheap fused XLA elementwise + reduce on a small slice.
        loss_sum = loss_sum + _focal_loss_sum_xla(flat_p[covered:],
                                                  flat_t[covered:])

    # Mean over the TRUE element count.
    return loss_sum / jnp.float32(total)


def focal_loss_ref(pred, target):
    """Pure-JAX transliteration of the PyTorch FocalLoss module."""
    x = pred.astype(jnp.float32)
    t = target.astype(jnp.float32)
    ce = jnp.maximum(x, 0.0) - x * t + jnp.log1p(jnp.exp(-jnp.abs(x)))
    alpha = t * ALPHA + (1.0 - t) * (1.0 - ALPHA)
    pt = jnp.where(t == 1.0, x, 1.0 - x)
    return jnp.mean(alpha * (1.0 - pt) ** GAMMA * ce)


if __name__ == "__main__":
    key = jax.random.PRNGKey(0)
    k1, k2 = jax.random.split(key)

    # NCHW-like shapes: batch=2, channels=4, spatial=16x16 -> 2048 elements
    # -> 16 lane-rows -> 2 grid blocks of 8 rows (kernel covers everything).
    shape = (2, 4, 16, 16)
    pred = jax.random.normal(k1, shape, dtype=jnp.float32)
    target = (jax.random.uniform(k2, shape) > 0.5).astype(jnp.float32)

    out = jax.block_until_ready(focal_loss(pred, target))
    ref = jax.block_until_ready(focal_loss_ref(pred, target))

    assert jnp.allclose(out, ref, rtol=1e-5, atol=1e-6), (out, ref)
    print("KERNEL_OK")
</pallas_src>

<mosaic_0001>
module attributes {stable_mosaic.version = 11 : i64} {
  func.func @_focal_loss_kernel(%arg0: i32, %arg1: memref<8x128xf32, #tpu.memory_space<vmem>>, %arg2: memref<8x128xf32, #tpu.memory_space<vmem>>, %arg3: memref<8x128xf32, #tpu.memory_space<vmem>>) attributes {dimension_semantics = [#tpu.dimension_semantics<parallel>], iteration_bounds = array<i64: 2>, scalar_prefetch = 0 : i64, scratch_operands = 0 : i64, tpu.core_type = #tpu.core_type<tc>, window_params = [{transform_indices = @transform_0, window_bounds = array<i64: 8, 128>}, {transform_indices = @transform_1, window_bounds = array<i64: 8, 128>}, {transform_indices = @transform_2, window_bounds = array<i64: 8, 128>}]} {
    %cst = arith.constant 0.000000e+00 : f32
    %0 = vector.broadcast %cst : f32 to vector<8x128xf32>
    %c0_i32 = arith.constant 0 : i32
    %c8_i32 = arith.constant 8 : i32
    %1 = arith.muli %c0_i32, %c8_i32 : i32
    %2 = tpu.assume_multiple %1, 8 : i32
    %3 = arith.index_cast %2 : i32 to index
    %c0 = arith.constant 0 : index
    %4 = vector.load %arg1[%3, %c0] : memref<8x128xf32, #tpu.memory_space<vmem>>, vector<8x128xf32>
    %5 = arith.index_cast %2 : i32 to index
    %c0_0 = arith.constant 0 : index
    %6 = vector.load %arg2[%5, %c0_0] : memref<8x128xf32, #tpu.memory_space<vmem>>, vector<8x128xf32>
    %cst_1 = arith.constant 0.000000e+00 : f32
    %7 = vector.broadcast %cst_1 : f32 to vector<8x128xf32>
    %8 = arith.maximumf %4, %7 : vector<8x128xf32>
    %9 = arith.mulf %4, %6 : vector<8x128xf32>
    %10 = arith.subf %8, %9 : vector<8x128xf32>
    %11 = math.absf %4 : vector<8x128xf32>
    %cst_2 = arith.constant 0.000000e+00 : f32
    %12 = vector.broadcast %cst_2 : f32 to vector<8x128xf32>
    %13 = arith.subf %12, %11 : vector<8x128xf32>
    %14 = math.exp %13 : vector<8x128xf32>
    %15 = math.log1p %14 : vector<8x128xf32>
    %16 = arith.addf %10, %15 : vector<8x128xf32>
    %cst_3 = arith.constant 5.000000e-01 : f32
    %17 = vector.broadcast %cst_3 : f32 to vector<8x128xf32>
    %18 = arith.mulf %17, %6 : vector<8x128xf32>
    %cst_4 = arith.constant 7.500000e-01 : f32
    %19 = vector.broadcast %cst_4 : f32 to vector<8x128xf32>
    %20 = arith.subf %19, %18 : vector<8x128xf32>
    %cst_5 = arith.constant 1.000000e+00 : f32
    %21 = vector.broadcast %cst_5 : f32 to vector<8x128xf32>
    %22 = arith.cmpf oeq, %6, %21 : vector<8x128xf32>
    %cst_6 = arith.constant 1.000000e+00 : f32
    %23 = vector.broadcast %cst_6 : f32 to vector<8x128xf32>
    %24 = arith.subf %23, %4 : vector<8x128xf32>
    %25 = arith.select %22, %24, %4 : vector<8x128xi1>, vector<8x128xf32>
    %26 = arith.mulf %25, %25 : vector<8x128xf32>
    %27 = arith.mulf %20, %26 : vector<8x128xf32>
    %28 = arith.mulf %27, %16 : vector<8x128xf32>
    %29 = vector.shape_cast %28 : vector<8x128xf32> to vector<1x8x128xf32>
    %cst_7 = arith.constant dense<0.000000e+00> : vector<8x128xf32>
    %30 = vector.multi_reduction <add>, %29, %cst_7 [0] : vector<1x8x128xf32> to vector<8x128xf32>
    %31 = arith.addf %0, %30 : vector<8x128xf32>
    %c1_i32 = arith.constant 1 : i32
    %c0_8 = arith.constant 0 : index
    %c0_9 = arith.constant 0 : index
    %32 = vector.load %arg3[%c0_8, %c0_9] : memref<8x128xf32, #tpu.memory_space<vmem>>, vector<8x128xf32>
    tpu.vector_store %arg3[%c0_8, %c0_9], %31 {strides = array<i32>} : memref<8x128xf32, #tpu.memory_space<vmem>>, vector<8x128xf32>,
    return
  }
  func.func @transform_0(%arg0: i32) -> (i32, i32) {
    %c0_i32 = arith.constant 0 : i32
    %c0_i32_0 = arith.constant 0 : i32
    return %arg0, %c0_i32 : i32, i32
  }
  func.func @transform_1(%arg0: i32) -> (i32, i32) {
    %c0_i32 = arith.constant 0 : i32
    %c0_i32_0 = arith.constant 0 : i32
    return %arg0, %c0_i32 : i32, i32
  }
  func.func @transform_2(%arg0: i32) -> (i32, i32) {
    %c0_i32 = arith.constant 0 : i32
    %c0_i32_0 = arith.constant 0 : i32
    return %arg0, %c0_i32 : i32, i32
  }
}

</mosaic_0001>

<bundles_post_ra>
// kernel: tpu_custom_call.1
= control target key start
LH: loop header
LB: loop body
LE: loop exit
PB: predicated region body
PF: predicated region fallthrough
CT: control target
= control target key end

     0   :  { %7 = vsyncpa [#allocation3], 0  ;;  %s721_s0 = inlined_call_operand.hbm [shape: f32[16,128], index: 0, kind: input, shape index: {}]   ;;  %s722_s1 = inlined_call_operand.hbm [shape: f32[16,128], index: 1, kind: input, shape index: {}]   ;;  %s723_s2 = inlined_call_operand.hbm [shape: f32[16,128], index: 2, kind: output, shape index: {}]  }
   0x1   :  { %9 = vsyncpa [#allocation3 + $0x1], 0 }
   0x2   :  { %10 = vsyncpa [#allocation6], 0 }
   0x3   :  { %12 = vsyncpa [#allocation6 + $0x1], 0 }
   0x4   :  { %13 = vsyncpa [#allocation4], 0 }
   0x5   :  { %15 = vsyncpa [#allocation4 + $0x1], 0  ;;  %s556_s9 = smov 0   ;;  %s558_s10 = smov 0  }
   0x6   :  { %s560_s11 = smov 0   ;;  %s562_s12 = smov 0  }
   0x7 LB: > { %s577_s13 = sadd.s32 4294967295, %s539_s12   ;;  %s339_s14 = sadd.s32 4294967294, %s539_s12   ;;  %s539_s12 = sphi %s562_s12, %s734_s12   ;;  %s535_s11 = sphi %s560_s11, %s733_s11   ;;  %s531_s10 = sphi %s558_s10, %s732_s10   ;;  %s527_s9 = sphi %s556_s9, %s731_s9  }
   0x8   : > { %s581_s15 = sadd.s32 1, %s539_s12   ;;  %s28_s16 = sadd.s32 1, %s535_s11 }
   0x9   : > { %s25_s17 = ssub.s32 %s539_s12, %s581_s15  ;;  %p35_p0 = scmp.ne.s32.totalorder %s535_s11, %s531_s10 }
   0xa   : > { %p26_p1 = scmp.eq.s32.totalorder %s25_s17, 0  ;;  %p36_p2 = scmp.eq.s32.totalorder %s539_s12, 0 }
   0xb   : > { %p41_p3 = scmp.ne.s32.totalorder %s531_s10, %s527_s9  ;;  %p42_p4 = scmp.eq.s32.totalorder %s577_s13, 0 }
   0xc   : > { %s593_s18 = scalar_select %p26_p1, %s535_s11, %s28_s16  }
   0xd   : > { %p595_p5 = por %p36_p2, %p35_p0  ;;  %p599_p6 = por %p42_p4, %p41_p3 }
   0xe   : > { %p91_p7 = scmp.eq.s32.totalorder %s577_s13, 1  ;;  %p97_p8 = scmp.eq.s32.totalorder %s339_s14, 1 }
   0xf   : > { %p371_p10 = scmp.lt.s32.totalorder %s539_s12, 2  ;;  %s615_s23 = sand.u32 1, %s535_s11  }
  0x10   : > { %p606_p11 = por %p91_p7, %p35_p0  ;;  %p610_p12 = por %p97_p8, %p41_p3 }
  0x11   : > { %s343_s24 = sshll.u32 %s539_s12, 3  ;;  %s342_s25 = sshll.u32 %s615_s23, 3 }
  0x12   : > { %s125_s28 = scalar_lea.hbm %s721_s0, %s343_s24  ;;  %s121_s30 = scalar_lea.vmem [#allocation2], %s342_s25 }
  0x13   : > { %s127_s29 = sshll.u32 %s125_s28, 4  ;;  %s129_s3 = sshll.u32 %s121_s30, 4  ;;  %s128_s29 = int_to_ptr.hbm [resolvable:$true] %s127_s29  ;;  %s130_s3 = int_to_ptr.vmem [resolvable:$true] %s129_s3 }
  0x14   : > { %p624_p13 = pnand %p371_p10, %p595_p5  ;;  %p346_p0 = scmp.ge.s32.totalorder %s539_s12, 1 }
  0x15   : > { %p153_p1 = scmp.lt.s32.totalorder %s539_s12, 3  ;;  %s118_s5 = scalar_lea.sflag [#allocation3], %s615_s23 }
  0x16   : > { %s409_s6 = sshra.s32 %s128_s29, 4  ;;  %p413_p3 = pneg %p624_p13  ;;  %s410_s6 = int_to_ptr.hbm [resolvable:$true] %s409_s6 }
  0x17   : > { %s411_s7 = scalar_lea.hbm %s410_s6, 8  ;;  %s416_s16 = scalar_lea.hbm %s721_s0, 16 }
  0x18   : > { %p412_p2 = scmp.ne.s32.totalorder %s410_s6, %s411_s7  ;;  %p417_p5 = scmp.lt.s32.totalorder %s410_s6, %s721_s0 }
  0x19   : > { %p418_p8 = scmp.lt.s32.totalorder %s416_s16, %s411_s7 }
  0x1a   : > { %p414_p4 = pnand %p413_p3, %p412_p2 }
  0x1b   : > { %p419_p10 = por %p418_p8, %p417_p5 }
  0x1c   : > { %p415_p7 = pneg %p414_p4 }
  0x1e   : > { %p420_p9 = pnand %p419_p10, %p415_p7 }
  0x20   : > { %423 = shalt.err (!%p420_p9)
}
  0x21   : > { %363 = dma.hbm_to_vmem [thread:$0]  (!%p624_p13), %s128_s29, 128, %s130_s3, %s118_s5  }
  0x22   : > { %p648_p2 = pnand %p346_p0, %p153_p1  ;;  %s144_s30 = scalar_lea.hbm %s722_s1, %s343_s24 }
  0x23   : > { %s146_s6 = sshll.u32 %s144_s30, 4  ;;  %s140_s7 = scalar_lea.vmem [#allocation5], %s342_s25  ;;  %s147_s6 = int_to_ptr.hbm [resolvable:$true] %s146_s6 }
  0x24   : > { %s148_s8 = sshll.u32 %s140_s7, 4  ;;  %s137_s14 = scalar_lea.sflag [#allocation6], %s615_s23  ;;  %s149_s8 = int_to_ptr.vmem [resolvable:$true] %s148_s8 }
  0x25   : > { %s439_s16 = sshra.s32 %s147_s6, 4  ;;  %s446_s5 = scalar_lea.hbm %s722_s1, 16  ;;  %s440_s16 = int_to_ptr.hbm [resolvable:$true] %s439_s16 }
  0x26   : > { %s441_s17 = scalar_lea.hbm %s440_s16, 8  ;;  %p447_p4 = scmp.lt.s32.totalorder %s440_s16, %s722_s1 }
  0x27   : > { %p442_p9 = scmp.ne.s32.totalorder %s440_s16, %s441_s17  ;;  %p448_p7 = scmp.lt.s32.totalorder %s446_s5, %s441_s17 }
  0x29   : > { %p444_p0 = pnand %p442_p9, %p413_p3  ;;  %p449_p5 = por %p448_p7, %p447_p4 }
  0x2b   : > { %p445_p1 = pneg %p444_p0 }
  0x2d   : > { %p450_p8 = pnand %p449_p5, %p445_p1 }
  0x2f   : > { %453 = shalt.err (!%p450_p8)
}
  0x30   : > { %366 = dma.hbm_to_vmem [thread:$0]  (!%p624_p13), %s147_s6, 128, %s149_s8, %s137_s14  }
  0x31   : > { %157 = sbr.rel (%p648_p2) target bundleno = 90 (0x5a), region = 28  ;;  %s670_s23 = sand.u32 (!%p648_p2), 1, %s531_s10  }
  0x32   : > { %s673_s25 = sshll.u32 (!%p648_p2), %s670_s23, 3  ;;  %s160_s27 = scalar_lea.sflag (!%p648_p2), [#allocation3], %s670_s23 }
  0x33   : > { %s163_s28 = scalar_lea.vmem (!%p648_p2), [#allocation2], %s673_s25 }
  0x36   : > { %514 = dma.done.wait (%p599_p6), %s160_s27, 128  }
  0x37   : > { %516 = vsyncadd (%p599_p6), %s160_s27, 4294967168  ;;  %s170_s4 = scalar_lea.sflag [#allocation6], %s670_s23  ;;  %s173_s26 = scalar_lea.vmem [#allocation5], %s673_s25 }
  0x38   : > { %518 = dma.done.wait (%p599_p6), %s170_s4, 128  }
  0x39   : > { %520 = vsyncadd (%p599_p6), %s170_s4, 4294967168  ;;  %v200_v0 = vld [vmem:[%s163_s28] sm:$0xff]  ;;  %v201_v4 = vld [vmem:[%s173_s26] sm:$0xff]  ;;  %s351_s20 = sshll.u32 %s577_s13, 3  ;;  %s199_s8 = scalar_lea.vmem [#allocation7], %s673_s25 }
  0x3a   : > { %v205_v1 = vand.u32 2147483647, %v200_v0  ;;  %v222_v6 = vsub.f32 1.0, %v200_v0  ;;  %vm221_vm0 = vcmp.eq.f32.partialorder %v201_v4, 1.0  ;;  %v219_v9 = vmul.f32 0.5, %v201_v4  ;;  %s241_s7 = scalar_lea.hbm %s723_s2, %s351_s20  ;;  %s243_s14 = sshll.u32 %s199_s8, 4  ;;  %s244_s14 = int_to_ptr.vmem [resolvable:$true] %s243_s14 }
  0x3b   : > { %v202_v12 = vmax.f32 %v200_v0, 0.0  ;;  %v203_v13 = vmul.f32 %v201_v4, %v200_v0  ;;  %s245_s16 = sshll.u32 %s241_s7, 4  ;;  %s231_s13 = scalar_lea.sflag [#allocation4], %s670_s23  ;;  %s246_s16 = int_to_ptr.hbm [resolvable:$true] %s245_s16 }
  0x3c   : > { %v206_v2 = vsub.f32 0.0, %v205_v1  ;;  %v223_v11 = vsel %vm221_vm0, %v222_v6, %v200_v0  ;;  %v220_v15 = vsub.f32 0.75, %v219_v9  ;;  %s483_s17 = sshra.s32 %s246_s16, 4  ;;  %s489_s19 = scalar_lea.hbm %s723_s2, 16  ;;  %s484_s17 = int_to_ptr.hbm [resolvable:$true] %s483_s17 }
  0x3d   : > { %v224_v16 = vmul.f32 %v223_v11, %v223_v11  ;;  %v204_v19 = vsub.f32 %v202_v12, %v203_v13  ;;  %s485_s29 = scalar_lea.hbm %s484_s17, 8  ;;  %p490_p10 = scmp.lt.s32.totalorder %s484_s17, %s723_s2 }
  0x3e   : > { %v207_v3 = vmul.f32 1.442695, %v206_v2  ;;  %p486_p6 = scmp.ne.s32.totalorder %s484_s17, %s485_s29  ;;  %p491_p2 = scmp.lt.s32.totalorder %s489_s19, %s485_s29 }
  0x3f   : > { %v225_v21 = vmul.f32 %v224_v16, %v220_v15 }
  0x40   : > { %405 = vpow2.f32 %v207_v3  ;;  %p487_p13 = pnand %p486_p6, %p606_p11  ;;  %p492_p9 = por %p491_p2, %p490_p10 }
  0x42   : > { %p488_p3 = pneg %p487_p13 }
  0x44   : > { %p493_p0 = pnand %p492_p9, %p488_p3 }
  0x46   : > { %v406_v5 = vpop.eup %405 }
  0x47   : > { %v209_v7 = vadd.f32 1.0, %v406_v5  ;;  %v212_v8 = vmul.f32 -0.5, %v406_v5  ;;  %v215_v14 = vand.u32 2147483647, %v406_v5 }
  0x49   : > { %407 = vlog2.f32 %v209_v7  ;;  %v213_v10 = vadd.f32 1.0, %v212_v8  ;;  %vm216_vm1 = vcmp.lt.f32.partialorder %v215_v14, 0.0004427343 }
  0x4b   : > { %v214_v17 = vmul.f32 %v406_v5, %v213_v10 }
  0x4f   : > { %v408_v18 = vpop.eup %407 }
  0x50   : > { %v211_v20 = vmul.f32 0.6931472, %v408_v18 }
  0x52   : > { %v217_v22 = vsel %vm216_vm1, %v214_v17, %v211_v20 }
  0x53   : > { %v218_v23 = vadd.f32 %v217_v22, %v204_v19 }
  0x55   : > { %v226_v24 = vmul.f32 %v225_v21, %v218_v23 }
  0x57   : > { %229 = vst [vmem:[%s199_s8] sm:$0xff] %v226_v24 }
  0x58   : > { %496 = shalt.err (!%p493_p0)
}
  0x59   : > { %358 = dma.vmem_to_hbm [thread:$0]  (%p606_p11), %s244_s14, 128, %s246_s16, %s231_s13  }
  0x5a PF: > { %s257_s23 = sand.u32 1, %s527_s9   ;;  %p730_p1 = scmp.ge.s32.totalorder %s539_s12, 2 }
  0x5b   : > { %s258_s27 = scalar_lea.sflag [#allocation4], %s257_s23 }
  0x5c   : > { %p368_p4 = pnand %p730_p1, %p610_p12 }
  0x5e   : > { %p369_p7 = pneg %p368_p4 }
  0x60   : > { %522 = dma.done.wait (%p369_p7), %s258_s27, 128  }
  0x61   : > { %524 = vsyncadd (%p369_p7), %s258_s27, 4294967168  ;;  %p18_p5 = scmp.ge.s32.totalorder %s581_s15, 4   ;;  %s731_s9 = smov %s531_s10 }
  0x62   : > { %s732_s10 = smov %s535_s11  ;;  %s733_s11 = smov %s593_s18 }
  0x63   : > { %s734_s12 = smov %s581_s15  ;;  %20 = sbr.rel (!%p18_p5) target bundleno = 7 (0x7), region = 86 }
  0x68   :  { %264 = vsyncpa [#allocation3], 1 }
  0x69   :  { %266 = vsyncpa [#allocation3 + $0x1], 1 }
  0x6a   :  { %267 = vsyncpa [#allocation6], 1 }
  0x6b   :  { %269 = vsyncpa [#allocation6 + $0x1], 1 }
  0x6c   :  { %270 = vsyncpa [#allocation4], 1 }
  0x6d   :  { %272 = vsyncpa [#allocation4 + $0x1], 1 }

</bundles_post_ra>
